<compile_context>
chip_gen: v7x
topology: tpu7x:2x2x1
jax: 0.10.0
libtpu: 0.0.40
codegen_flags: <defaults>
</compile_context>

<pallas_src>
import functools

import numpy as np
import jax
import jax.numpy as jnp
from jax import lax
from jax.experimental import pallas as pl
from jax.experimental.pallas import tpu as pltpu

# ---------------------------------------------------------------------------
# Model hyper-parameters (small, deterministic, consistent with the module)
# ---------------------------------------------------------------------------
N_NODES    = 64     # number of graph nodes
F_IN       = 32     # graph.x feature dim (num_features)
HIDDEN_C   = 32     # params.hidden_c
OUT_C      = 16     # params.out_c
NO_HEADS   = 4      # graph.no_cls (multiheads=True)
MULTIHEADS = True
E_GRAPH    = 128    # number of (directed) random graph edges before symmetrization
E_QUERY    = 32     # number of query edges

FEAT_W = HIDDEN_C + NO_HEADS * OUT_C                       # 96 real feature lanes
SLAB_W = ((FEAT_W + NO_HEADS + 3 + 127) // 128) * 128      # 128: lane-dense slab

# Block-diagonal per-head reduce matrix (trace-time constant; passed as bf16).
HEAD_MAT_F32 = jnp.asarray(
    np.kron(np.eye(NO_HEADS, dtype=np.float32), np.ones((OUT_C, 1), np.float32)))


# ---------------------------------------------------------------------------
# Fused Pallas kernel
# ---------------------------------------------------------------------------
def _fused_gnn_kernel(a_ref, x_ref, w1_ref, b1_ref, w2_ref, b2_ref,
                      head_ref, q_ref, yh_ref, out_ref,
                      *, no_heads, e_query, multiheads):
    n = a_ref.shape[0]
    hidden_c = w1_ref.shape[1]
    hw = w2_ref.shape[1]            # no_heads * out_c
    e = e_query
    two_e = q_ref.shape[0]
    slab_w = out_ref.shape[1]
    feat_w = hidden_c + hw

    f32 = jnp.float32
    bf16 = jnp.bfloat16

    # ---- conv1 + ReLU:  hiddens = relu(A_hat @ (X @ W1) + b1) ----------------
    xw1 = jnp.dot(x_ref[...], w1_ref[...], preferred_element_type=f32)
    hiddens = jnp.maximum(
        jnp.dot(a_ref[...], xw1.astype(bf16), preferred_element_type=f32)
        + b1_ref[...], 0.0)                                            # (N, Hc) f32

    # ---- conv2:  emb_flat = A_hat @ (hiddens @ W2) + b2 ----------------------
    hw2 = jnp.dot(hiddens.astype(bf16), w2_ref[...], preferred_element_type=f32)
    emb_flat = (jnp.dot(a_ref[...], hw2.astype(bf16), preferred_element_type=f32)
                + b2_ref[...])                                         # (N, H*F) f32

    # ---- merged row gather: ONE (2E,N) one-hot selector, ONE MXU matmul ------
    node_iota = lax.broadcasted_iota(jnp.int32, (two_e, n), 1)          # (2E, N)
    sel = (q_ref[...] == node_iota).astype(f32).astype(bf16)            # exact 0/1
    gathered = jnp.dot(sel, emb_flat.astype(bf16),
                       preferred_element_type=f32)                      # (2E, H*F)
    emb_i = gathered[:e]
    emb_j = gathered[e:]

    # ---- per-head dot products: VPU multiply + block-diag MXU reduce ---------
    prod = emb_i * emb_j                                                # (E, H*F) f32
    preds = jnp.dot(prod.astype(bf16), head_ref[...],
                    preferred_element_type=f32)                         # (E, H) f32

    # ---- in-kernel head selection (pred_i / pred_j / pred) -------------------
    head_iota = lax.broadcasted_iota(jnp.int32, (two_e, no_heads), 1)   # (2E, H)
    ymask = (yh_ref[...] == head_iota).astype(f32)                      # one-hot
    pred_i = jnp.sum(preds * ymask[:e], axis=-1, keepdims=True)         # (E, 1)
    pred_j = jnp.sum(preds * ymask[e:], axis=-1, keepdims=True)
    pred = 0.5 * (pred_i + pred_j) if multiheads else pred_i

    # ---- pack into one lane-dense (N, 128) slab with direct slice stores -----
    out_ref[...] = jnp.zeros((n, slab_w), f32)          # clear padding once
    out_ref[:, 0:hidden_c] = hiddens
    out_ref[:, hidden_c:feat_w] = emb_flat
    out_ref[0:e, feat_w:feat_w + no_heads] = preds
    out_ref[0:e, feat_w + no_heads:feat_w + no_heads + 1] = pred_i
    out_ref[0:e, feat_w + no_heads + 1:feat_w + no_heads + 2] = pred_j
    out_ref[0:e, feat_w + no_heads + 2:feat_w + no_heads + 3] = pred


def fused_gnn(a_hat, x, w1, b1, w2, b2, q_all, yq_all):
    """Single-dispatch fused forward.  Returns the packed (N, SLAB_W) slab."""
    n = x.shape[0]
    e = q_all.shape[0] // 2
    assert e <= n, "slab packing assumes E_QUERY <= N_NODES"
    assert FEAT_W + NO_HEADS + 3 <= SLAB_W

    vmem = pl.BlockSpec(memory_space=pltpu.MemorySpace.VMEM)
    kernel = functools.partial(_fused_gnn_kernel, no_heads=NO_HEADS,
                               e_query=e, multiheads=MULTIHEADS)
    bf16 = jnp.bfloat16
    return pl.pallas_call(
        kernel,
        out_shape=jax.ShapeDtypeStruct((n, SLAB_W), jnp.float32),
        in_specs=[vmem] * 9,
        out_specs=vmem,
    )(a_hat.astype(bf16), x.astype(bf16), w1.astype(bf16), b1,
      w2.astype(bf16), b2, HEAD_MAT_F32.astype(bf16), q_all, yq_all)


# ---------------------------------------------------------------------------
# Plain-JAX glue
# ---------------------------------------------------------------------------
def normalized_adjacency(edge_index, n):
    """Dense GCN propagation matrix: D^-1/2 (A + I) D^-1/2 (symmetric graph)."""
    src, dst = edge_index
    a = jnp.zeros((n, n), jnp.float32).at[dst, src].add(1.0)
    a = jnp.minimum(a, 1.0)                      # de-duplicate random multi-edges
    a = a + jnp.eye(n, dtype=jnp.float32)        # add self loops
    deg = jnp.sum(a, axis=1)
    dinv = jnp.where(deg > 0, 1.0 / jnp.sqrt(deg), 0.0)
    return dinv[:, None] * a * dinv[None, :]


def gnn_forward(x, a_hat, params, q_edge_index, y):
    n = x.shape[0]
    e = q_edge_index.shape[1]
    q_row = q_edge_index[0].astype(jnp.int32)
    q_col = q_edge_index[1].astype(jnp.int32)

    # Tiny input-side gathers / packing (done once, before the single dispatch).
    y_eff = y if MULTIHEADS else jnp.zeros_like(y)
    q_all = jnp.concatenate([q_row, q_col]).reshape(2 * e, 1)
    yq_all = jnp.concatenate([y_eff[q_row], y_eff[q_col]]
                             ).reshape(2 * e, 1).astype(jnp.int32)

    slab = fused_gnn(a_hat, x, params["w1"], params["b1"],
                     params["w2"], params["b2"], q_all, yq_all)

    hiddens  = slab[:, :HIDDEN_C]
    emb_flat = slab[:, HIDDEN_C:FEAT_W]
    preds    = slab[:e, FEAT_W:FEAT_W + NO_HEADS]
    pred_i   = slab[:e, FEAT_W + NO_HEADS]
    pred_j   = slab[:e, FEAT_W + NO_HEADS + 1]
    pred     = slab[:e, FEAT_W + NO_HEADS + 2]
    emb = emb_flat.reshape(n, NO_HEADS, OUT_C)

    return {"hiddens": hiddens, "emb": emb, "preds": preds,
            "pred_i": pred_i, "pred_j": pred_j, "pred": pred}


def gnn_forward_reference(x, a_hat, params, q_edge_index, y):
    """Pure-jnp reference mirroring the PyTorch forward semantics with the same
    bf16-operand / f32-accumulation cast points as the kernel."""
    f32, bf = jnp.float32, (lambda t: t.astype(jnp.bfloat16))
    xw1 = jnp.dot(bf(x), bf(params["w1"]), preferred_element_type=f32)
    hiddens = jnp.maximum(
        jnp.dot(bf(a_hat), bf(xw1), preferred_element_type=f32) + params["b1"], 0.0)
    hw2 = jnp.dot(bf(hiddens), bf(params["w2"]), preferred_element_type=f32)
    emb_flat = (jnp.dot(bf(a_hat), bf(hw2), preferred_element_type=f32)
                + params["b2"])
    emb = emb_flat.reshape(x.shape[0], NO_HEADS, OUT_C)

    q_row, q_col = q_edge_index
    emb_i = bf(emb_flat)[q_row].astype(f32)
    emb_j = bf(emb_flat)[q_col].astype(f32)
    prod = emb_i * emb_j
    preds = jnp.dot(bf(prod), bf(HEAD_MAT_F32), preferred_element_type=f32)

    y_eff = y if MULTIHEADS else jnp.zeros_like(y)
    pred_i = jnp.take_along_axis(preds, y_eff[q_row][:, None], axis=1)[:, 0]
    pred_j = jnp.take_along_axis(preds, y_eff[q_col][:, None], axis=1)[:, 0]
    pred = 0.5 * (pred_i + pred_j) if MULTIHEADS else pred_i
    return {"hiddens": hiddens, "emb": emb, "preds": preds,
            "pred_i": pred_i, "pred_j": pred_j, "pred": pred}


# ---------------------------------------------------------------------------
# Main
# ---------------------------------------------------------------------------
if __name__ == "__main__":
    key = jax.random.PRNGKey(0)
    k_x, k_e, k_q, k_y, k_w1, k_b1, k_w2, k_b2 = jax.random.split(key, 8)

    # Graph data
    x = jax.random.normal(k_x, (N_NODES, F_IN), jnp.float32)
    e_src = jax.random.randint(k_e, (E_GRAPH,), 0, N_NODES)
    e_dst = jax.random.randint(jax.random.fold_in(k_e, 1), (E_GRAPH,), 0, N_NODES)
    # symmetrize the graph (GCN normalization assumes undirected edges)
    edge_index = jnp.stack([jnp.concatenate([e_src, e_dst]),
                            jnp.concatenate([e_dst, e_src])])
    q_edge_index = jax.random.randint(k_q, (2, E_QUERY), 0, N_NODES)
    y = jax.random.randint(k_y, (N_NODES,), 0, NO_HEADS)

    # Parameters (deterministic synthetic init; GCNConv weight is (in, out))
    w1 = jax.random.normal(k_w1, (F_IN, HIDDEN_C), jnp.float32) * 0.1
    b1 = jax.random.normal(k_b1, (1, HIDDEN_C), jnp.float32) * 0.1
    # conv2 weight is a concat of NO_HEADS independent (hidden, out_c) weights
    head_ws = [jax.random.normal(jax.random.fold_in(k_w2, h),
                                 (HIDDEN_C, OUT_C), jnp.float32) * 0.1
               for h in range(NO_HEADS)]
    w2 = jnp.concatenate(head_ws, axis=-1)                 # (HIDDEN_C, OUT_C*NO_HEADS)
    b2 = jax.random.normal(k_b2, (1, OUT_C * NO_HEADS), jnp.float32) * 0.1
    params = {"w1": w1, "b1": b1, "w2": w2, "b2": b2}

    a_hat = normalized_adjacency(edge_index, N_NODES)

    out = gnn_forward(x, a_hat, params, q_edge_index, y)
    out = jax.block_until_ready(out)

    ref = gnn_forward_reference(x, a_hat, params, q_edge_index, y)
    for name in ("hiddens", "emb", "preds", "pred_i", "pred_j", "pred"):
        assert out[name].shape == ref[name].shape, name
        assert jnp.allclose(out[name], ref[name], atol=2e-3, rtol=2e-3), name

    print("KERNEL_OK")
</pallas_src>

<mosaic_0001>
module attributes {stable_mosaic.version = 11 : i64} {
  func.func @_fused_gnn_kernel(%arg0: memref<64x64xbf16, #tpu.memory_space<vmem>>, %arg1: memref<64x32xbf16, #tpu.memory_space<vmem>>, %arg2: memref<32x32xbf16, #tpu.memory_space<vmem>>, %arg3: memref<1x32xf32, #tpu.memory_space<vmem>>, %arg4: memref<32x64xbf16, #tpu.memory_space<vmem>>, %arg5: memref<1x64xf32, #tpu.memory_space<vmem>>, %arg6: memref<64x4xbf16, #tpu.memory_space<vmem>>, %arg7: memref<64x1xi32, #tpu.memory_space<vmem>>, %arg8: memref<64x1xi32, #tpu.memory_space<vmem>>, %arg9: memref<64x128xf32, #tpu.memory_space<vmem>>) attributes {dimension_semantics = [], scalar_prefetch = 0 : i64, scratch_operands = 0 : i64, tpu.core_type = #tpu.core_type<tc>} {
    %c0 = arith.constant 0 : index
    %c0_0 = arith.constant 0 : index
    %0 = vector.load %arg1[%c0, %c0_0] : memref<64x32xbf16, #tpu.memory_space<vmem>>, vector<64x32xbf16>
    %c0_1 = arith.constant 0 : index
    %c0_2 = arith.constant 0 : index
    %1 = vector.load %arg2[%c0_1, %c0_2] : memref<32x32xbf16, #tpu.memory_space<vmem>>, vector<32x32xbf16>
    %cst = arith.constant dense<0.000000e+00> : vector<64x32xf32>
    %2 = tpu.matmul %0, %1, %cst {dimension_numbers = #tpu.dot_dimension_numbers<[1], [0], [0], [1], [0, 0, 1, 1], [], []>} : vector<64x32xbf16>, vector<32x32xbf16>, vector<64x32xf32> -> vector<64x32xf32>
    %c0_3 = arith.constant 0 : index
    %c0_4 = arith.constant 0 : index
    %3 = vector.load %arg0[%c0_3, %c0_4] : memref<64x64xbf16, #tpu.memory_space<vmem>>, vector<64x64xbf16>
    %4 = arith.truncf %2 : vector<64x32xf32> to vector<64x32xbf16>
    %cst_5 = arith.constant dense<0.000000e+00> : vector<64x32xf32>
    %5 = tpu.matmul %3, %4, %cst_5 {dimension_numbers = #tpu.dot_dimension_numbers<[1], [0], [0], [1], [0, 0, 1, 1], [], []>} : vector<64x64xbf16>, vector<64x32xbf16>, vector<64x32xf32> -> vector<64x32xf32>
    %c0_6 = arith.constant 0 : index
    %c0_7 = arith.constant 0 : index
    %6 = vector.load %arg3[%c0_6, %c0_7] : memref<1x32xf32, #tpu.memory_space<vmem>>, vector<1x32xf32>
    %7 = vector.broadcast %6 : vector<1x32xf32> to vector<64x32xf32>
    %8 = arith.addf %5, %7 : vector<64x32xf32>
    %cst_8 = arith.constant 0.000000e+00 : f32
    %9 = vector.broadcast %cst_8 : f32 to vector<64x32xf32>
    %10 = arith.maximumf %8, %9 : vector<64x32xf32>
    %11 = arith.truncf %10 : vector<64x32xf32> to vector<64x32xbf16>
    %c0_9 = arith.constant 0 : index
    %c0_10 = arith.constant 0 : index
    %12 = vector.load %arg4[%c0_9, %c0_10] : memref<32x64xbf16, #tpu.memory_space<vmem>>, vector<32x64xbf16>
    %cst_11 = arith.constant dense<0.000000e+00> : vector<64x64xf32>
    %13 = tpu.matmul %11, %12, %cst_11 {dimension_numbers = #tpu.dot_dimension_numbers<[1], [0], [0], [1], [0, 0, 1, 1], [], []>} : vector<64x32xbf16>, vector<32x64xbf16>, vector<64x64xf32> -> vector<64x64xf32>
    %c0_12 = arith.constant 0 : index
    %c0_13 = arith.constant 0 : index
    %14 = vector.load %arg0[%c0_12, %c0_13] : memref<64x64xbf16, #tpu.memory_space<vmem>>, vector<64x64xbf16>
    %15 = arith.truncf %13 : vector<64x64xf32> to vector<64x64xbf16>
    %cst_14 = arith.constant dense<0.000000e+00> : vector<64x64xf32>
    %16 = tpu.matmul %14, %15, %cst_14 {dimension_numbers = #tpu.dot_dimension_numbers<[1], [0], [0], [1], [0, 0, 1, 1], [], []>} : vector<64x64xbf16>, vector<64x64xbf16>, vector<64x64xf32> -> vector<64x64xf32>
    %c0_15 = arith.constant 0 : index
    %c0_16 = arith.constant 0 : index
    %17 = vector.load %arg5[%c0_15, %c0_16] : memref<1x64xf32, #tpu.memory_space<vmem>>, vector<1x64xf32>
    %18 = vector.broadcast %17 : vector<1x64xf32> to vector<64x64xf32>
    %19 = arith.addf %16, %18 : vector<64x64xf32>
    %20 = tpu.iota {dimensions = array<i32: 1>} : vector<64x64xi32>
    %c0_17 = arith.constant 0 : index
    %c0_18 = arith.constant 0 : index
    %21 = vector.load %arg7[%c0_17, %c0_18] : memref<64x1xi32, #tpu.memory_space<vmem>>, vector<64x1xi32>
    %22 = vector.broadcast %21 : vector<64x1xi32> to vector<64x64xi32>
    %23 = arith.cmpi eq, %22, %20 : vector<64x64xi32>
    %24 = arith.extui %23 : vector<64x64xi1> to vector<64x64xi32>
    %25 = arith.sitofp %24 : vector<64x64xi32> to vector<64x64xf32>
    %26 = arith.truncf %25 : vector<64x64xf32> to vector<64x64xbf16>
    %27 = arith.truncf %19 : vector<64x64xf32> to vector<64x64xbf16>
    %cst_19 = arith.constant dense<0.000000e+00> : vector<64x64xf32>
    %28 = tpu.matmul %26, %27, %cst_19 {dimension_numbers = #tpu.dot_dimension_numbers<[1], [0], [0], [1], [0, 0, 1, 1], [], []>} : vector<64x64xbf16>, vector<64x64xbf16>, vector<64x64xf32> -> vector<64x64xf32>
    %29 = vector.extract_strided_slice %28 {offsets = [0, 0], sizes = [32, 64], strides = [1, 1]} : vector<64x64xf32> to vector<32x64xf32>
    %30 = vector.extract_strided_slice %28 {offsets = [32, 0], sizes = [32, 64], strides = [1, 1]} : vector<64x64xf32> to vector<32x64xf32>
    %31 = arith.mulf %29, %30 : vector<32x64xf32>
    %32 = arith.truncf %31 : vector<32x64xf32> to vector<32x64xbf16>
    %c0_20 = arith.constant 0 : index
    %c0_21 = arith.constant 0 : index
    %33 = vector.load %arg6[%c0_20, %c0_21] : memref<64x4xbf16, #tpu.memory_space<vmem>>, vector<64x4xbf16>
    %cst_22 = arith.constant dense<0.000000e+00> : vector<32x4xf32>
    %34 = tpu.matmul %32, %33, %cst_22 {dimension_numbers = #tpu.dot_dimension_numbers<[1], [0], [0], [1], [0, 0, 1, 1], [], []>} : vector<32x64xbf16>, vector<64x4xbf16>, vector<32x4xf32> -> vector<32x4xf32>
    %35 = tpu.iota {dimensions = array<i32: 1>} : vector<64x4xi32>
    %c0_23 = arith.constant 0 : index
    %c0_24 = arith.constant 0 : index
    %36 = vector.load %arg8[%c0_23, %c0_24] : memref<64x1xi32, #tpu.memory_space<vmem>>, vector<64x1xi32>
    %37 = vector.broadcast %36 : vector<64x1xi32> to vector<64x4xi32>
    %38 = arith.cmpi eq, %37, %35 : vector<64x4xi32>
    %39 = arith.extui %38 : vector<64x4xi1> to vector<64x4xi32>
    %40 = arith.sitofp %39 : vector<64x4xi32> to vector<64x4xf32>
    %41 = vector.extract_strided_slice %40 {offsets = [0, 0], sizes = [32, 4], strides = [1, 1]} : vector<64x4xf32> to vector<32x4xf32>
    %42 = arith.mulf %34, %41 : vector<32x4xf32>
    %cst_25 = arith.constant dense<0.000000e+00> : vector<32xf32>
    %43 = vector.multi_reduction <add>, %42, %cst_25 [1] : vector<32x4xf32> to vector<32xf32>
    %44 = vector.shape_cast %43 : vector<32xf32> to vector<32x1xf32>
    %45 = vector.extract_strided_slice %40 {offsets = [32, 0], sizes = [32, 4], strides = [1, 1]} : vector<64x4xf32> to vector<32x4xf32>
    %46 = arith.mulf %34, %45 : vector<32x4xf32>
    %cst_26 = arith.constant dense<0.000000e+00> : vector<32xf32>
    %47 = vector.multi_reduction <add>, %46, %cst_26 [1] : vector<32x4xf32> to vector<32xf32>
    %48 = vector.shape_cast %47 : vector<32xf32> to vector<32x1xf32>
    %49 = arith.addf %44, %48 : vector<32x1xf32>
    %cst_27 = arith.constant 5.000000e-01 : f32
    %50 = vector.broadcast %cst_27 : f32 to vector<32x1xf32>
    %51 = arith.mulf %50, %49 : vector<32x1xf32>
    %cst_28 = arith.constant 0.000000e+00 : f32
    %52 = vector.broadcast %cst_28 : f32 to vector<64x128xf32>
    %c0_29 = arith.constant 0 : index
    %c0_30 = arith.constant 0 : index
    %53 = vector.load %arg9[%c0_29, %c0_30] : memref<64x128xf32, #tpu.memory_space<vmem>>, vector<64x128xf32>
    tpu.vector_store %arg9[%c0_29, %c0_30], %52 {strides = array<i32>} : memref<64x128xf32, #tpu.memory_space<vmem>>, vector<64x128xf32>,
    %c0_31 = arith.constant 0 : index
    %c0_32 = arith.constant 0 : index
    %54 = vector.load %arg9[%c0_31, %c0_32] : memref<64x128xf32, #tpu.memory_space<vmem>>, vector<64x32xf32>
    tpu.vector_store %arg9[%c0_31, %c0_32], %10 {strides = array<i32>} : memref<64x128xf32, #tpu.memory_space<vmem>>, vector<64x32xf32>,
    %c0_33 = arith.constant 0 : index
    %c32 = arith.constant 32 : index
    %55 = vector.load %arg9[%c0_33, %c32] : memref<64x128xf32, #tpu.memory_space<vmem>>, vector<64x64xf32>
    tpu.vector_store %arg9[%c0_33, %c32], %19 {strides = array<i32>} : memref<64x128xf32, #tpu.memory_space<vmem>>, vector<64x64xf32>,
    %c0_34 = arith.constant 0 : index
    %c96 = arith.constant 96 : index
    %56 = vector.load %arg9[%c0_34, %c96] : memref<64x128xf32, #tpu.memory_space<vmem>>, vector<32x4xf32>
    tpu.vector_store %arg9[%c0_34, %c96], %34 {strides = array<i32>} : memref<64x128xf32, #tpu.memory_space<vmem>>, vector<32x4xf32>,
    %c0_35 = arith.constant 0 : index
    %c100 = arith.constant 100 : index
    %57 = vector.load %arg9[%c0_35, %c100] : memref<64x128xf32, #tpu.memory_space<vmem>>, vector<32x1xf32>
    tpu.vector_store %arg9[%c0_35, %c100], %44 {strides = array<i32>} : memref<64x128xf32, #tpu.memory_space<vmem>>, vector<32x1xf32>,
    %c0_36 = arith.constant 0 : index
    %c101 = arith.constant 101 : index
    %58 = vector.load %arg9[%c0_36, %c101] : memref<64x128xf32, #tpu.memory_space<vmem>>, vector<32x1xf32>
    tpu.vector_store %arg9[%c0_36, %c101], %48 {strides = array<i32>} : memref<64x128xf32, #tpu.memory_space<vmem>>, vector<32x1xf32>,
    %c0_37 = arith.constant 0 : index
    %c102 = arith.constant 102 : index
    %59 = vector.load %arg9[%c0_37, %c102] : memref<64x128xf32, #tpu.memory_space<vmem>>, vector<32x1xf32>
    tpu.vector_store %arg9[%c0_37, %c102], %51 {strides = array<i32>} : memref<64x128xf32, #tpu.memory_space<vmem>>, vector<32x1xf32>,
    return
  }
}

</mosaic_0001>

<bundles_post_ra>
// kernel: tpu_custom_call.1
= control target key start
LH: loop header
LB: loop body
LE: loop exit
PB: predicated region body
PF: predicated region fallthrough
CT: control target
= control target key end

     0   :  { %vm78_vm0 = vcmask 261120   ;;  %s1446_s0 = inlined_call_operand.vmem [shape: bf16[64,64], index: 0, kind: input, shape index: {}]   ;;  %s1447_s1 = inlined_call_operand.vmem [shape: bf16[64,32], index: 1, kind: input, shape index: {}]   ;;  %s1448_s2 = inlined_call_operand.vmem [shape: bf16[32,32], index: 2, kind: input, shape index: {}]   ;;  %s1449_s3 = inlined_call_operand.vmem [shape: f32[1,32], index: 3, kind: input, shape index: {}]   ;;  %s1450_s4 = inlined_call_operand.vmem [shape: bf16[32,64], index: 4, kind: input, shape index: {}]   ;;  %s1451_s5 = inlined_call_operand.vmem [shape: f32[1,64], index: 5, kind: input, shape index: {}]   ;;  %s1452_s6 = inlined_call_operand.vmem [shape: bf16[64,4], index: 6, kind: input, shape index: {}]   ;;  %s1453_s7 = inlined_call_operand.vmem [shape: s32[64,1], index: 7, kind: input, shape index: {}]   ;;  %s1454_s8 = inlined_call_operand.vmem [shape: s32[64,1], index: 8, kind: input, shape index: {}]   ;;  %s1455_s9 = inlined_call_operand.hbm [shape: f32[64,128], index: 9, kind: output, shape index: {}]  }
   0x1   :  { %v1087_v0 = vld [vmem:[%s1448_s2] sm:$0xff]   ;;  %v1088_v1 = vld [vmem:[%s1448_s2 + $0x8] sm:$0xff]   ;;  %v1091_v4 = vld [vmem:[%s1447_s1 + $0x10] sm:$0xff]  }
   0x2   :  { %994 = vmatprep.subr.bf16.mxu0 %v1087_v0  ;;  %v1089_v2 = vld [vmem:[%s1447_s1] sm:$0xff]   ;;  %v1090_v3 = vld [vmem:[%s1447_s1 + $0x8] sm:$0xff]  }
   0x3   :  { %995 = vmatpush3.bf16.msra.mxu0 %v1087_v0  ;;  %998 = vmatprep.mubr.msk.bf16.mxu0 %vm78_vm0, %v1089_v2 }
   0x4   :  { %996 = vmatprep.subr.bf16.mxu0 %v1088_v1 }
   0x7   :  { %997 = vmatpush3.bf16.msra.mxu0 %v1088_v1 }
   0xa   :  { %999 = vmatmul.mubr.msk.bf16.vlgmr.msra.gmra.mrb[0].mxu0 %vm78_vm0, %v1090_v3 }
   0xb   :  { %1002 = vmatprep.mubr.msk.bf16.mxu0 %vm78_vm0, %v1091_v4 }
   0xc   :  { %14 = vsyncpa [#allocation3], 0  ;;  %v1092_v5 = vld [vmem:[%s1447_s1 + $0x18] sm:$0xff]   ;;  %v1093_v6 = vld [vmem:[%s1446_s0] sm:$0xff]   ;;  %vm195_vm1 = vcmask 523264   ;;  %v1127_v23 = vmov 0.0  }
   0xd   :  { %1014 = vmatprep.mubr.msk.bf16.mxu1 %vm195_vm1, %v1093_v6  ;;  %v1097_v7 = vld [vmem:[%s1450_s4] sm:$0xff]   ;;  %v1216_v20 = vld [vmem:[%s1446_s0 + $0x8] sm:$0xff]   ;;  %v1221_v21 = vld [vmem:[%s1446_s0 + $0x10] sm:$0xff]   ;;  %787 = vst [vmem:[#allocation2] sm:$0xff] %v1127_v23  ;;  %v1128_v56 = vmov 0   ;;  %s1129_s15 = smov 32  }
   0xe   :  { %1022 = vmatprep.subr.bf16.mxu0 %v1097_v7  ;;  %v1230_v22 = vld [vmem:[%s1446_s0 + $0x18] sm:$0xff]   ;;  %788 = vst [vmem:[#allocation2 + $0x8] sm:$0xff] %v1127_v23  ;;  %789 = vst [vmem:[#allocation2 + $0x10] sm:$0xff] %v1127_v23  ;;  %v1098_v24 = vld [vmem:[%s1450_s4 + $0x8] sm:$0xff]   ;;  %1085 = vset.pattern.permute.xlu0 %v1128_v56  ;;  %vm835_vm10 = vcmask 785664   ;;  %s1131_s22 = smov [#allocation2]  }
   0xf   :  { %1023 = vmatpush3.bf16.msra.mxu0 %v1097_v7  ;;  %790 = vst [vmem:[#allocation2 + $0x18] sm:$0xff] %v1127_v23  ;;  %791 = vst [vmem:[#allocation2 + $0x20] sm:$0xff] %v1127_v23  ;;  %v906_v25 = vld [vmem:[%s1449_s3] ss:$0 sm:$0xff]  ;;  %v458_v55 = vld [vmem:[%s1453_s7 + $0x10] sm:$0xff]  ;;  %1086 = vset.pattern.permute.xlu1 %v1128_v56  ;;  %s885_s23 = sshll.u32 %s1131_s22, 4  ;;  %s886_s23 = int_to_ptr.vmem [resolvable:$true] %s885_s23 }
  0x10   :  { %792 = vst [vmem:[#allocation2 + $0x28] sm:$0xff] %v1127_v23  ;;  %793 = vst [vmem:[#allocation2 + $0x30] sm:$0xff] %v1127_v23  ;;  %1024 = vmatprep.subr.bf16.mxu0 %v1098_v24  ;;  %v456_v54 = vld [vmem:[%s1453_s7] sm:$0xff]  ;;  %471 = vperm.xlu1 %1086, %v458_v55   ;;  %v457_v57 = vld [vmem:[%s1453_s7 + $0x8] sm:$0xff]  ;;  %s1103_s1 = scalar_lea.vmem %s886_s23, 1024  ;;  %p1108_p1 = scmp.lt.s32.totalorder %s886_s23, %s886_s23 }
  0x11   :  { %794 = vst [vmem:[#allocation2 + $0x38] sm:$0xff] %v1127_v23  ;;  %465 = vperm.xlu0 %1085, %v456_v54   ;;  %v459_v58 = vld [vmem:[%s1453_s7 + $0x18] sm:$0xff]  ;;  %v460_v59 = vld [vmem:[%s1453_s7 + $0x20] sm:$0xff]  ;;  %v461_v60 = vld [vmem:[%s1453_s7 + $0x28] sm:$0xff]  ;;  %p1104_p0 = scmp.ne.s32.totalorder %s886_s23, %s1103_s1  ;;  %p1109_p2 = scmp.lt.s32.totalorder %s1103_s1, %s1103_s1 }
  0x12   :  { %1003 = vmatmul.mubr.msk.bf16.gmra.mrb[4].mxu0 %vm78_vm0, %v1092_v5  ;;  %v462_v61 = vld [vmem:[%s1453_s7 + $0x30] sm:$0xff]  ;;  %v463_v62 = vld [vmem:[%s1453_s7 + $0x38] sm:$0xff]  ;;  %v690_v63 = vld [vmem:[%s1454_s8] sm:$0xff] }
  0x13   :  { %1025 = vmatpush3.bf16.msra.mxu0 %v1098_v24  ;;  %v691_v0 = vld [vmem:[%s1454_s8 + $0x8] sm:$0xff]  ;;  %v692_v1 = vld [vmem:[%s1454_s8 + $0x10] sm:$0xff]  ;;  %v693_v2 = vld [vmem:[%s1454_s8 + $0x18] sm:$0xff]  ;;  %p1110_p3 = por %p1109_p2, %p1108_p1 }
  0x14   :  { %474 = vperm.xlu1 %1086, %v459_v58   ;;  %v694_v3 = vld [vmem:[%s1454_s8 + $0x20] sm:$0xff]  ;;  %v695_v4 = vld [vmem:[%s1454_s8 + $0x28] sm:$0xff]  ;;  %v696_v5 = vld [vmem:[%s1454_s8 + $0x30] sm:$0xff] }
  0x15   :  { %468 = vperm.xlu0 %1085, %v457_v57   ;;  %p1111_p4 = pnand %p1110_p3, %p1104_p0 }
  0x18   :  { %480 = vperm.xlu1 %1086, %v461_v60  }
  0x19   :  { %477 = vperm.xlu0 %1085, %v460_v59  }
  0x1c   :  { %486 = vperm.xlu1 %1086, %v463_v62  }
  0x1d   :  { %483 = vperm.xlu0 %1085, %v462_v61  }
  0x20   :  { %702 = vperm.xlu1 %1086, %v691_v0  }
  0x21   :  { %699 = vperm.xlu0 %1085, %v690_v63  }
  0x24   :  { %708 = vperm.xlu1 %1086, %v693_v2  }
  0x25   :  { %705 = vperm.xlu0 %1085, %v692_v1  }
  0x28   :  { %714 = vperm.xlu1 %1086, %v695_v4  }
  0x29   :  { %711 = vperm.xlu0 %1085, %v694_v3   ;;  %v1099_v3 = vld [vmem:[%s1452_s6] sm:$0xff]  }
  0x2d   :  { %717 = vperm.xlu0 %1085, %v696_v5  }
  0xdd   :  { %v1000_v8 = vpop.f32.mrb[0].mxu0 }
  0xde   :  { %v125_v9 = vpop.f32.mrb[1].mxu0 }
  0xdf   :  { %v1001_v10 = vpop.f32.mrb[2].mxu0 }
  0xe0   :  { %v165_v11 = vpack.c.bf16 %v1001_v10, %v1000_v8  ;;  %v128_v12 = vpop.f32.mrb[3].mxu0 }
  0xe1   :  { %v164_v13 = vpack.c.bf16 %v128_v12, %v125_v9 }
  0xe3   :  { %1006 = vmatprep.subr.bf16.mxu1 %v164_v13 }
  0xe4   :  { %1007 = vmatpush3.bf16.msra.mxu1 %v164_v13 }
  0xe5   :  { %v1004_v14 = vpop.f32.mrb[4].mxu0  ;;  %1008 = vmatprep.subr.bf16.mxu1 %v165_v11 }
  0xe6   :  { %v141_v15 = vpop.f32.mrb[5].mxu0 }
  0xe7   :  { %v1005_v16 = vpop.f32.mrb[6].mxu0 }
  0xe8   :  { %v167_v17 = vpack.c.bf16 %v1005_v16, %v1004_v14  ;;  %v144_v18 = vpop.f32.mrb[7].mxu0  ;;  %1009 = vmatpush3.bf16.msra.mxu1 %v165_v11 }
  0xe9   :  { %v166_v19 = vpack.c.bf16 %v144_v18, %v141_v15 }
  0xeb   :  { %1010 = vmatprep.subr.bf16.mxu1 %v166_v19 }
  0xec   :  { %1011 = vmatpush3.bf16.msra.mxu1 %v166_v19  ;;  %v454_v19 = vlaneseq }
  0xed   :  { %1012 = vmatprep.subr.bf16.mxu1 %v167_v17 }
  0xee   :  { %v1313_v24 = vand.u32 127, %v454_v19 }
  0xf0   :  { %1013 = vmatpush3.bf16.msra.mxu1 %v167_v17 }
  0xf3   :  { %1015 = vmatmul.mubr.msk.bf16.vlgmr.msra.gmra.mrb[0].mxu1 %vm195_vm1, %v1216_v20 }
  0xf4   :  { %1018 = vmatprep.mubr.msk.bf16.mxu1 %vm195_vm1, %v1221_v21 }
  0xfb   :  { %1019 = vmatmul.mubr.msk.bf16.gmra.mrb[4].mxu1 %vm195_vm1, %v1230_v22 }
  0xfc   :  { %1042 = vmatprep.mubr.msk.bf16.mxu1 %vm195_vm1, %v1093_v6  ;;  %v697_v6 = vld [vmem:[%s1454_s8 + $0x38] sm:$0xff] }
  0xfd   :  { %720 = vperm.xlu1 %1086, %v697_v6   ;;  %v1100_v6 = vld [vmem:[%s1452_s6 + $0x8] sm:$0xff]  }
 0x1c6   :  { %v1016_v26 = vpop.f32.mrb[0].mxu1 }
 0x1c7   :  { %v251_v27 = vadd.f32 %v1016_v26, %v906_v25  ;;  %v242_v28 = vpop.f32.mrb[1].mxu1 }
 0x1c8   :  { %v243_v29 = vadd.f32 %v906_v25, %v242_v28  ;;  %v1017_v30 = vpop.f32.mrb[2].mxu1 }
 0x1c9   :  { %v275_v31 = vmax.f32 %v251_v27, 0.0  ;;  %v254_v32 = vadd.f32 %v1017_v30, %v906_v25  ;;  %v245_v33 = vpop.f32.mrb[3].mxu1 }
 0x1ca   :  { %v273_v34 = vmax.f32 %v243_v29, 0.0  ;;  %v246_v35 = vadd.f32 %v906_v25, %v245_v33 }
 0x1cb   :  { %v276_v36 = vmax.f32 %v254_v32, 0.0  ;;  %797 = vst.msk [vmem:[#allocation2 + $0x10] sm:$0xff] %vm78_vm0, %v275_v31 }
 0x1cc   :  { %v274_v37 = vmax.f32 %v246_v35, 0.0  ;;  %795 = vst.msk [vmem:[#allocation2] sm:$0xff] %vm78_vm0, %v273_v34 }
 0x1cd   :  { %v282_v38 = vpack.c.bf16 %v276_v36, %v275_v31  ;;  %798 = vst.msk [vmem:[#allocation2 + $0x18] sm:$0xff] %vm78_vm0, %v276_v36 }
 0x1ce   :  { %v281_v39 = vpack.c.bf16 %v274_v37, %v273_v34  ;;  %v1020_v40 = vpop.f32.mrb[4].mxu1  ;;  %796 = vst.msk [vmem:[#allocation2 + $0x8] sm:$0xff] %vm78_vm0, %v274_v37  ;;  %v472_v34 = vpop.permute.xlu1 %471 }
 0x1cf   :  { %v267_v41 = vadd.f32 %v1020_v40, %v906_v25  ;;  %v258_v42 = vpop.f32.mrb[5].mxu1  ;;  %vm490_vm4 = vcmp.eq.s32.totalorder %v472_v34, %v1313_v24 }
 0x1d0   :  { %v259_v43 = vadd.f32 %v906_v25, %v258_v42  ;;  %v1021_v44 = vpop.f32.mrb[6].mxu1  ;;  %1026 = vmatprep.mubr.msk.bf16.mxu0 %vm78_vm0, %v281_v39 }
 0x1d1   :  { %v279_v45 = vmax.f32 %v267_v41, 0.0  ;;  %v270_v46 = vadd.f32 %v1021_v44, %v906_v25  ;;  %v261_v47 = vpop.f32.mrb[7].mxu1  ;;  %1027 = vmatmul.mubr.msk.bf16.vlgmr.msra.gmra.mrb[8].mxu0 %vm78_vm0, %v282_v38 }
 0x1d2   :  { %v277_v48 = vmax.f32 %v259_v43, 0.0  ;;  %v262_v49 = vadd.f32 %v906_v25, %v261_v47  ;;  %v466_v25 = vpop.permute.xlu0 %465  ;;  %v475_v41 = vpop.permute.xlu1 %474 }
 0x1d3   :  { %v280_v50 = vmax.f32 %v270_v46, 0.0  ;;  %801 = vst.msk [vmem:[#allocation2 + $0x30] sm:$0xff] %vm78_vm0, %v279_v45  ;;  %vm488_vm2 = vcmp.eq.s32.totalorder %v466_v25, %v1313_v24  ;;  %vm491_vm5 = vcmp.eq.s32.totalorder %v475_v41, %v1313_v24 }
 0x1d4   :  { %v278_v51 = vmax.f32 %v262_v49, 0.0  ;;  %799 = vst.msk [vmem:[#allocation2 + $0x20] sm:$0xff] %vm78_vm0, %v277_v48  ;;  %v926_v26 = vsel %vm488_vm2, 1.0, %v1127_v23  ;;  %vm750_vm2 = vcmask 31744  }
 0x1d5   :  { %v284_v52 = vpack.c.bf16 %v280_v50, %v279_v45  ;;  %802 = vst.msk [vmem:[#allocation2 + $0x38] sm:$0xff] %vm78_vm0, %v280_v50 }
 0x1d6   :  { %v283_v53 = vpack.c.bf16 %v278_v51, %v277_v48  ;;  %800 = vst.msk [vmem:[#allocation2 + $0x28] sm:$0xff] %vm78_vm0, %v278_v51  ;;  %v469_v27 = vpop.permute.xlu0 %468  ;;  %v481_v50 = vpop.permute.xlu1 %480 }
 0x1d7   :  { %vm489_vm3 = vcmp.eq.s32.totalorder %v469_v27, %v1313_v24  ;;  %vm493_vm7 = vcmp.eq.s32.totalorder %v481_v50, %v1313_v24 }
 0x1d8   :  { %1030 = vmatprep.mubr.msk.bf16.mxu0 %vm78_vm0, %v283_v53  ;;  %v927_v28 = vsel %vm489_vm3, 1.0, %v1127_v23  ;;  %v929_v53 = vsel %vm491_vm5, 1.0, %v1127_v23  ;;  %v931_v55 = vsel %vm493_vm7, 1.0, %v1127_v23  ;;  %vm865_vm5 = vcmask 827168  }
 0x1d9   :  { %1031 = vmatmul.mubr.msk.bf16.gmra.mrb[12].mxu0 %vm78_vm0, %v284_v52  ;;  %v928_v52 = vsel %vm490_vm4, 1.0, %v1127_v23  ;;  %vm860_vm4 = vcmask 818944   ;;  %vm875_vm7 = vcmask 843568  }
 0x1da   :  { %v478_v49 = vpop.permute.xlu0 %477  ;;  %v513_v56 = vpack.c.bf16 %v929_v53, %v928_v52  ;;  %v487_v59 = vpop.permute.xlu1 %486 }
 0x1db   :  { %vm492_vm6 = vcmp.eq.s32.totalorder %v478_v49, %v1313_v24  ;;  %vm495_vm9 = vcmp.eq.s32.totalorder %v487_v59, %v1313_v24 }
 0x1dc   :  { %v930_v54 = vsel %vm492_vm6, 1.0, %v1127_v23  ;;  %v933_v61 = vsel %vm495_vm9, 1.0, %v1127_v23  ;;  %vm870_vm6 = vcmask 835368  }
 0x1dd   :  { %v514_v57 = vpack.c.bf16 %v931_v55, %v930_v54 }
 0x1de   :  { %v484_v58 = vpop.permute.xlu0 %483  ;;  %v1352_v63 = vpop.permute.xlu1 %702 }
 0x1df   :  { %vm494_vm8 = vcmp.eq.s32.totalorder %v484_v58, %v1313_v24  ;;  %vm723_vm15 = vcmp.eq.s32.totalorder %v1352_v63, %v1313_v24 }
 0x1e0   :  { %v932_v60 = vsel %vm494_vm8, 1.0, %v1127_v23 }
 0x1e1   :  { %v515_v62 = vpack.c.bf16 %v933_v61, %v932_v60 }
 0x1e2   :  { %v700_v0 = vpop.permute.xlu0 %699  ;;  %v709_v1 = vpop.permute.xlu1 %708 }
 0x1e3   :  { %vm722_vm12 = vcmp.eq.s32.totalorder %v700_v0, %v1313_v24  ;;  %vm725_vm14 = vcmp.eq.s32.totalorder %v709_v1, %v1313_v24 }
 0x1e6   :  { %v706_v2 = vpop.permute.xlu0 %705  ;;  %v1357_v4 = vpop.permute.xlu1 %714 }
 0x1e7   :  { %vm724_vm11 = vcmp.eq.s32.totalorder %v706_v2, %v1313_v24  ;;  %vm727_vm0 = vcmp.eq.s32.totalorder %v1357_v4, %v1313_v24 }
 0x1ea   :  { %v712_v5 = vpop.permute.xlu0 %711 }
 0x1eb   :  { %vm726_vm13 = vcmp.eq.s32.totalorder %v712_v5, %v1313_v24 }
 0x2a4   :  { %v1028_v7 = vpop.f32.mrb[8].mxu0 }
 0x2a5   :  { %v347_v8 = vpop.f32.mrb[9].mxu0 }
 0x2a6   :  { %v1029_v9 = vpop.f32.mrb[10].mxu0 }
 0x2a7   :  { %v379_v10 = vpack.c.bf16 %v1029_v9, %v1028_v7  ;;  %v350_v11 = vpop.f32.mrb[11].mxu0  ;;  %v1362_v7 = vpop.permute.xlu1 %720 }
 0x2a8   :  { %v378_v12 = vpack.c.bf16 %v350_v11, %v347_v8  ;;  %v1101_v8 = vld [vmem:[%s1452_s6 + $0x10] sm:$0xff]   ;;  %v1367_v9 = vpop.permute.xlu0 %717  ;;  %v1102_v11 = vld [vmem:[%s1452_s6 + $0x18] sm:$0xff]   ;;  %s1130_s6 = smov 96   ;;  %vm729_vm3 = vcmp.eq.s32.totalorder %v1362_v7, %v1313_v24 }
 0x2aa   :  { %1034 = vmatprep.subr.bf16.mxu1 %v378_v12 }
 0x2ab   :  { %1035 = vmatpush3.bf16.msra.mxu1 %v378_v12 }
 0x2ac   :  { %v1032_v13 = vpop.f32.mrb[12].mxu0  ;;  %1036 = vmatprep.subr.bf16.mxu1 %v379_v10 }
 0x2ad   :  { %v363_v14 = vpop.f32.mrb[13].mxu0 }
 0x2ae   :  { %v1033_v15 = vpop.f32.mrb[14].mxu0 }
 0x2af   :  { %v381_v16 = vpack.c.bf16 %v1033_v15, %v1032_v13  ;;  %v366_v17 = vpop.f32.mrb[15].mxu0  ;;  %1037 = vmatpush3.bf16.msra.mxu1 %v379_v10 }
 0x2b0   :  { %v380_v18 = vpack.c.bf16 %v366_v17, %v363_v14 }
 0x2b2   :  { %1038 = vmatprep.subr.bf16.mxu1 %v380_v18 }
 0x2b3   :  { %1039 = vmatpush3.bf16.msra.mxu1 %v380_v18 }
 0x2b4   :  { %1040 = vmatprep.subr.bf16.mxu1 %v381_v16 }
 0x2b7   :  { %1041 = vmatpush3.bf16.msra.mxu1 %v381_v16 }
 0x2b8   :  { %1066 = vmatprep.subr.bf16.mxu1 %v1099_v3 }
 0x2ba   :  { %1043 = vmatmul.mubr.msk.bf16.vlgmr.msra.gmra.mrb[8].mxu1 %vm195_vm1, %v1216_v20  ;;  %v512_v20 = vpack.c.bf16 %v927_v28, %v926_v26 }
 0x2bb   :  { %1046 = vmatprep.mubr.msk.bf16.mxu1 %vm195_vm1, %v1221_v21  ;;  %v921_v21 = vld [vmem:[%s1451_s5] ss:$0 sm:$0xff]  ;;  %1067 = vmatpush3.bf16.msra.mxu1 %v1099_v3 }
 0x2bc   :  { %1058 = vmatprep.mubr.msk.bf16.mxu0 %vm195_vm1, %v512_v20  ;;  %1068 = vmatprep.subr.bf16.mxu1 %v1100_v6 }
 0x2bf   :  { %1069 = vmatpush3.bf16.msra.mxu1 %v1100_v6 }
 0x2c0   :  { %1070 = vmatprep.subr.bf16.mxu1 %v1101_v8 }
 0x2c2   :  { %1047 = vmatmul.mubr.msk.bf16.gmra.mrb[12].mxu1 %vm195_vm1, %v1230_v22 }
 0x2c3   :  { %1071 = vmatpush3.bf16.msra.mxu1 %v1101_v8 }
 0x2c4   :  { %1072 = vmatprep.subr.bf16.mxu1 %v1102_v11 }
 0x2c7   :  { %1073 = vmatpush3.bf16.msra.mxu1 %v1102_v11 }
 0x38d   :  { %v1044_v29 = vpop.f32.mrb[8].mxu1 }
 0x38e   :  { %v432_v30 = vadd.f32 %v1044_v29, %v921_v21  ;;  %v423_v22 = vpop.f32.mrb[9].mxu1 }
 0x38f   :  { %v1045_v31 = vpop.f32.mrb[10].mxu1  ;;  %v424_v35 = vadd.f32 %v921_v21, %v423_v22 }
 0x390   :  { %v435_v32 = vadd.f32 %v1045_v31, %v921_v21  ;;  %815 = vrot.lane.b32.xlu1 %v432_v30, %s1129_s15  ;;  %v426_v33 = vpop.f32.mrb[11].mxu1 }
 0x391   :  { %v427_v36 = vadd.f32 %v921_v21, %v426_v33  ;;  %v946_v33 = vsel %vm724_vm11, 1.0, %v1127_v23 }
 0x392   :  { %v517_v37 = vpack.c.bf16 %v435_v32, %v432_v30 }
 0x393   :  { %v516_v38 = vpack.c.bf16 %v427_v36, %v424_v35  ;;  %813 = vrot.lane.b32.xlu0 %v427_v36, %s1129_s15  ;;  %v948_v36 = vsel %vm726_vm13, 1.0, %v1127_v23 }
 0x394   :  { %811 = vrot.lane.b32.xlu1 %v424_v35, %s1129_s15  ;;  %v944_v35 = vsel %vm722_vm12, 1.0, %v1127_v23 }
 0x395   :  { %v1048_v39 = vpop.f32.mrb[12].mxu1  ;;  %1050 = vmatprep.subr.bf16.mxu0 %v516_v38 }
 0x396   :  { %v439_v40 = vpop.f32.mrb[13].mxu1  ;;  %1051 = vmatpush3.bf16.msra.mxu0 %v516_v38  ;;  %v1332_v47 = vadd.f32 %v1048_v39, %v921_v21  ;;  %v947_v39 = vsel %vm725_vm14, 1.0, %v1127_v23 }
 0x397   :  { %v440_v42 = vadd.f32 %v921_v21, %v439_v40  ;;  %v1049_v43 = vpop.f32.mrb[14].mxu1  ;;  %1052 = vmatprep.subr.bf16.mxu0 %v517_v37 }
 0x398   :  { %v442_v44 = vpop.f32.mrb[15].mxu1  ;;  %817 = vrot.lane.b32.xlu1 %v435_v32, %s1129_s15  ;;  %v1329_v45 = vadd.f32 %v1049_v43, %v921_v21  ;;  %v945_v43 = vsel %vm723_vm15, 1.0, %v1127_v23 }
 0x399   :  { %v443_v46 = vadd.f32 %v921_v21, %v442_v44  ;;  %819 = vrot.lane.b32.xlu0 %v440_v42, %s1129_s15  ;;  %v949_v44 = vsel %vm727_vm0, 1.0, %v1127_v23 }
 0x39a   :  { %1053 = vmatpush3.bf16.msra.mxu0 %v517_v37  ;;  %v519_v51 = vpack.c.bf16 %v1329_v45, %v1332_v47 }
 0x39b   :  { %v518_v48 = vpack.c.bf16 %v443_v46, %v440_v42 }
 0x39c   :  { %821 = vrot.lane.b32.xlu1 %v443_v46, %s1129_s15 }
 0x39d   :  { %1054 = vmatprep.subr.bf16.mxu0 %v518_v48 }
 0x39e   :  { %1055 = vmatpush3.bf16.msra.mxu0 %v518_v48 }
 0x39f   :  { %1056 = vmatprep.subr.bf16.mxu0 %v519_v51 }
 0x3a2   :  { %1057 = vmatpush3.bf16.msra.mxu0 %v519_v51 }
 0x3a5   :  { %1059 = vmatmul.mubr.msk.bf16.vlgmr.msra.gmra.mrb[16].mxu0 %vm195_vm1, %v513_v56  ;;  %v951_v56 = vsel %vm729_vm3, 1.0, %v1127_v23 }
 0x3a6   :  { %1062 = vmatprep.mubr.msk.bf16.mxu0 %vm195_vm1, %v514_v57 }
 0x3ad   :  { %1063 = vmatmul.mubr.msk.bf16.gmra.mrb[20].mxu0 %vm195_vm1, %v515_v62 }
 0x402   :  { %v816_v10 = vpop.permute.xlu1 %815 }
 0x403   :  { %838 = vst.msk [vmem:[#allocation2 + $0x10] sm:$0xff] %vm835_vm10, %v816_v10 }
 0x405   :  { %v814_v12 = vpop.permute.xlu0 %813 }
 0x406   :  { %837 = vst.msk [vmem:[#allocation2 + $0x8] sm:$0xff] %vm835_vm10, %v814_v12  ;;  %v812_v13 = vpop.permute.xlu1 %811 }
 0x407   :  { %836 = vst.msk [vmem:[#allocation2] sm:$0xff] %vm835_vm10, %v812_v13 }
 0x40a   :  { %v818_v14 = vpop.permute.xlu1 %817 }
 0x40b   :  { %839 = vst.msk [vmem:[#allocation2 + $0x18] sm:$0xff] %vm835_vm10, %v818_v14  ;;  %v820_v15 = vpop.permute.xlu0 %819 }
 0x40c   :  { %840 = vst.msk [vmem:[#allocation2 + $0x20] sm:$0xff] %vm835_vm10, %v820_v15 }
 0x40e   :  { %v822_v16 = vpop.permute.xlu1 %821 }
 0x40f   :  { %841 = vst.msk [vmem:[#allocation2 + $0x28] sm:$0xff] %vm835_vm10, %v822_v16 }
 0x478   :  { %v1060_v17 = vpop.f32.mrb[16].mxu0 }
 0x479   :  { %v566_v18 = vpop.f32.mrb[17].mxu0 }
 0x47a   :  { %v1061_v19 = vpop.f32.mrb[18].mxu0 }
 0x47b   :  { %v569_v25 = vpop.f32.mrb[19].mxu0 }
 0x480   :  { %v1064_v26 = vpop.f32.mrb[20].mxu0 }
 0x481   :  { %v599_v27 = vmul.f32 %v1064_v26, %v1060_v17  ;;  %v582_v28 = vpop.f32.mrb[21].mxu0 }
 0x482   :  { %v597_v20 = vmul.f32 %v582_v28, %v566_v18  ;;  %v1065_v21 = vpop.f32.mrb[22].mxu0 }
 0x483   :  { %v600_v29 = vmul.f32 %v1065_v21, %v1061_v19  ;;  %v585_v30 = vpop.f32.mrb[23].mxu0 }
 0x484   :  { %v598_v22 = vmul.f32 %v585_v30, %v569_v25 }
 0x485   :  { %v602_v31 = vpack.c.bf16 %v600_v29, %v599_v27 }
 0x486   :  { %v601_v32 = vpack.c.bf16 %v598_v22, %v597_v20 }
 0x488   :  { %1074 = vmatprep.mubr.msk.bf16.mxu1 %vm195_vm1, %v601_v32 }
 0x489   :  { %1075 = vmatmul.mubr.msk.bf16.vlgmr.msra.gmra.mrb[16].mxu1 %vm195_vm1, %v602_v31  ;;  %vm728_vm1 = vcmp.eq.s32.totalorder %v1367_v9, %v1313_v24 }
 0x48a   :  { %v950_v51 = vsel %vm728_vm1, 1.0, %v1127_v23 }
 0x55c   :  { %v1076_v34 = vpop.f32.mrb[16].mxu1 }
 0x55d   :  { %852 = vrot.lane.b32.xlu0 %v1076_v34, %s1130_s6  ;;  %v675_v37 = vpop.f32.mrb[17].mxu1  ;;  %v748_v38 = vmul.f32 %v1076_v34, %v946_v33  ;;  %v765_v52 = vmul.f32 %v1076_v34, %v950_v51 }
 0x55e   :  { %v1077_v40 = vpop.f32.mrb[18].mxu1  ;;  %v746_v41 = vmul.f32 %v944_v35, %v675_v37  ;;  %v763_v42 = vmul.f32 %v948_v36, %v675_v37 }
 0x55f   :  { %854 = vrot.lane.b32.xlu1 %v1077_v40, %s1130_s6  ;;  %v678_v46 = vpop.f32.mrb[19].mxu1  ;;  %v749_v48 = vmul.f32 %v1077_v40, %v947_v39  ;;  %v757_v53 = vsel %vm750_vm2, %v748_v38, 0.0  ;;  %v773_v54 = vsel %vm750_vm2, %v765_v52, 0.0  ;;  %v766_v58 = vmul.f32 %v1077_v40, %v951_v56 }
 0x560   :  { %v747_v49 = vmul.f32 %v945_v43, %v678_v46  ;;  %v764_v50 = vmul.f32 %v949_v44, %v678_v46  ;;  %v751_v55 = vsel %vm750_vm2, %v746_v41, 0.0  ;;  %v767_v24 = vsel %vm750_vm2, %v763_v42, 0.0 }
 0x561   :  { %848 = vrot.lane.b32.xlu0 %v675_v37, %s1130_s6  ;;  %v760_v57 = vsel %vm750_vm2, %v749_v48, 0.0  ;;  %v776_v59 = vsel %vm750_vm2, %v766_v58, 0.0 }
 0x562   :  { %v770_v60 = vsel %vm750_vm2, %v764_v50, 0.0  ;;  %v754_v23 = vsel %vm750_vm2, %v747_v49, 0.0 }
 0x580   :  { %758 = vadd.xlane.f32.xlu0 %v757_v53 }
 0x583   :  { %774 = vadd.xlane.f32.xlu1 %v773_v54 }
 0x584   :  { %752 = vadd.xlane.f32.xlu0 %v751_v55 }
 0x588   :  { %761 = vadd.xlane.f32.xlu0 %v760_v57 }
 0x58c   :  { %777 = vadd.xlane.f32.xlu0 %v776_v59 }
 0x590   :  { %771 = vadd.xlane.f32.xlu0 %v770_v60 }
 0x594   :  { %850 = vrot.lane.b32.xlu1 %v678_v46, %s1130_s6 }
 0x5a6   :  { %823 = vrot.lane.b32.xlu0 %v1332_v47, %s1129_s15 }
 0x5b8   :  { %768 = vadd.xlane.f32.xlu1 %v767_v24 }
 0x5bc   :  { %755 = vadd.xlane.f32.xlu1 %v754_v23 }
 0x5cd   :  { %825 = vrot.lane.b32.xlu1 %v1329_v45, %s1129_s15 }
 0x5cf   :  { %v853_v61 = vpop.permute.xlu0 %852 }
 0x5d0   :  { %863 = vst.msk [vmem:[#allocation2 + $0x10] sm:$0xff] %vm860_vm4, %v853_v61 }
 0x5d1   :  { %v855_v62 = vpop.permute.xlu1 %854 }
 0x5d2   :  { %864 = vst.msk [vmem:[#allocation2 + $0x18] sm:$0xff] %vm860_vm4, %v855_v62 }
 0x5d3   :  { %v849_v63 = vpop.permute.xlu0 %848 }
 0x5d4   :  { %861 = vst.msk [vmem:[#allocation2] sm:$0xff] %vm860_vm4, %v849_v63 }
 0x60d   :  { %v759_v47 = vpop.xlane.xlu0 %758 }
 0x60e   :  { %868 = vst.msk [vmem:[#allocation2 + $0x10] sm:$0xff] %vm865_vm5, %v759_v47 }
 0x610   :  { %v775_v0 = vpop.xlane.xlu1 %774 }
 0x611   :  { %v781_v1 = vadd.f32 %v775_v0, %v759_v47  ;;  %873 = vst.msk [vmem:[#allocation2 + $0x10] sm:$0xff] %vm870_vm6, %v775_v0  ;;  %v753_v45 = vpop.xlane.xlu0 %752 }
 0x612   :  { %866 = vst.msk [vmem:[#allocation2] sm:$0xff] %vm865_vm5, %v753_v45 }
 0x613   :  { %v785_v2 = vmul.f32 0.5, %v781_v1 }
 0x614   :  { %v851_v3 = vpop.permute.xlu1 %850 }
 0x615   :  { %878 = vst.msk [vmem:[#allocation2 + $0x10] sm:$0xff] %vm875_vm7, %v785_v2  ;;  %v762_v4 = vpop.xlane.xlu0 %761 }
 0x616   :  { %862 = vst.msk [vmem:[#allocation2 + $0x8] sm:$0xff] %vm860_vm4, %v851_v3 }
 0x617   :  { %869 = vst.msk [vmem:[#allocation2 + $0x18] sm:$0xff] %vm865_vm5, %v762_v4 }
 0x619   :  { %v778_v5 = vpop.xlane.xlu0 %777 }
 0x61a   :  { %v782_v6 = vadd.f32 %v778_v5, %v762_v4  ;;  %874 = vst.msk [vmem:[#allocation2 + $0x18] sm:$0xff] %vm870_vm6, %v778_v5 }
 0x61c   :  { %v786_v7 = vmul.f32 0.5, %v782_v6 }
 0x61d   :  { %v772_v8 = vpop.xlane.xlu0 %771 }
 0x61e   :  { %879 = vst.msk [vmem:[#allocation2 + $0x18] sm:$0xff] %vm875_vm7, %v786_v7 }
 0x621   :  { %v824_v9 = vpop.permute.xlu0 %823 }
 0x622   :  { %842 = vst.msk [vmem:[#allocation2 + $0x30] sm:$0xff] %vm835_vm10, %v824_v9 }
 0x645   :  { %v769_v10 = vpop.xlane.xlu1 %768 }
 0x646   :  { %v779_v11 = vadd.f32 %v769_v10, %v753_v45  ;;  %871 = vst.msk [vmem:[#allocation2] sm:$0xff] %vm870_vm6, %v769_v10 }
 0x648   :  { %v783_v12 = vmul.f32 0.5, %v779_v11 }
 0x649   :  { %v756_v13 = vpop.xlane.xlu1 %755 }
 0x64a   :  { %876 = vst.msk [vmem:[#allocation2] sm:$0xff] %vm875_vm7, %v783_v12  ;;  %v780_v14 = vadd.f32 %v772_v8, %v756_v13 }
 0x64b   :  { %867 = vst.msk [vmem:[#allocation2 + $0x8] sm:$0xff] %vm865_vm5, %v756_v13 }
 0x64c   :  { %872 = vst.msk [vmem:[#allocation2 + $0x8] sm:$0xff] %vm870_vm6, %v772_v8  ;;  %v784_v15 = vmul.f32 0.5, %v780_v14 }
 0x64d   :  { %v826_v16 = vpop.permute.xlu1 %825 }
 0x64e   :  { %877 = vst.msk [vmem:[#allocation2 + $0x8] sm:$0xff] %vm875_vm7, %v784_v15 }
 0x64f   :  { %843 = vst.msk [vmem:[#allocation2 + $0x38] sm:$0xff] %vm835_vm10, %v826_v16 }
 0x650   :  { %1114 = shalt.err (!%p1111_p4)
}
 0x651   :  { %s1115_s26 = scalar_lea.hbm %s1455_s9, 1024 }
 0x652   :  { %p1116_p5 = scmp.ne.s32.totalorder %s1455_s9, %s1115_s26  ;;  %p1119_p6 = scmp.lt.u32.totalorder %s1115_s26, %s1455_s9 }
 0x654   :  { %p1121_p7 = pnand %p1119_p6, %p1116_p5 }
 0x656   :  { %1124 = shalt.err (!%p1121_p7)
}
 0x657   :  { %s1132_s7 = smov 128   ;;  %s1133_s30 = smov 8  }
 0x658   :  { %891 = dma.vmem_to_hbm [thread:$0]  %s886_s23, 1024, %s1455_s9, [#allocation3], %s1132_s7, %s1132_s7, %s1133_s30  }
 0x659   :  { %1125 = dma.done.wait [#allocation3], 1024  }
 0x65a   :  { %1126 = vsyncadd [#allocation3], 4294966272 }
 0x65b   :  { %895 = vsyncpa [#allocation3], 1 }

</bundles_post_ra>
